<compile_context>
chip_gen: v7x
topology: tpu7x:2x2x1
jax: 0.10.0
libtpu: 0.0.40
codegen_flags: <defaults>
</compile_context>

<pallas_src>
import functools

import jax
import jax.numpy as jnp
from jax import lax
from jax.experimental import pallas as pl
from jax.experimental.pallas import tpu as pltpu


_FUSED_FOOTPRINT_BUDGET = 48 * 1024 * 1024   # conservative: double-buffered slab must fit v7x 64 MiB
_VMEM_LIMIT_BYTES = 64 * 1024 * 1024         # <= physical VMEM on v5e/v6e/v7x


# ---------------------------------------------------------------------------
# Fused path: whole sample (C, HW) resident per grid step.
# ---------------------------------------------------------------------------
def _groupnorm1_fused_kernel(x_ref, w_ref, b_ref, o_ref, *, eps, inv_n):
    """GroupNorm(num_groups=1) over one sample.

    x_ref : (C, HW) native dtype  -- one batch sample (batch dim squeezed)
    w_ref : (C, 1)  f32           -- per-channel scale (resident across grid)
    b_ref : (C, 1)  f32           -- per-channel shift (resident across grid)
    o_ref : (C, HW) native dtype
    """
    x = x_ref[...].astype(jnp.float32)            # promote only in vregs
    # Single pass for both statistics; f32 accumulation (see correctness note).
    s = jnp.sum(x, keepdims=True)                 # (1, 1)
    s2 = jnp.sum(x * x, keepdims=True)            # (1, 1)
    mean = s * inv_n
    var = s2 * inv_n - mean * mean                # biased, matches torch GroupNorm
    rstd = lax.rsqrt(var + eps)                   # EUP
    # Fold affine into per-channel scale/shift -> 2 full-tile VPU passes total.
    scale = rstd * w_ref[...]                     # (C, 1)
    shift = b_ref[...] - mean * scale             # (C, 1)
    o_ref[...] = (x * scale + shift).astype(o_ref.dtype)


def _pre_norm_fused(x2, w2, b2, *, eps):
    b, c, hw = x2.shape
    itemsize = x2.dtype.itemsize
    kernel = functools.partial(_groupnorm1_fused_kernel, eps=eps, inv_n=1.0 / (c * hw))
    cost = pl.CostEstimate(
        flops=9 * b * c * hw,
        transcendentals=b,
        bytes_accessed=2 * b * c * hw * itemsize + 8 * c,
    )
    return pl.pallas_call(
        kernel,
        out_shape=jax.ShapeDtypeStruct((b, c, hw), x2.dtype),
        grid=(b,),
        in_specs=[
            # One sample per step; batch dim squeezed out of the kernel view.
            pl.BlockSpec((pl.Squeezed(), c, hw), lambda i: (i, 0, 0)),
            # Params: constant block index -> stay resident, no re-DMA per step.
            pl.BlockSpec((c, 1), lambda i: (0, 0)),
            pl.BlockSpec((c, 1), lambda i: (0, 0)),
        ],
        out_specs=pl.BlockSpec((pl.Squeezed(), c, hw), lambda i: (i, 0, 0)),
        compiler_params=pltpu.CompilerParams(
            dimension_semantics=("parallel",),        # megacore sharding on v7x
            vmem_limit_bytes=_VMEM_LIMIT_BYTES,
        ),
        cost_estimate=cost,
    )(x2, w2, b2)


# ---------------------------------------------------------------------------
# Chunked two-pass path: used when the per-sample slab does not fit VMEM
# (e.g. large LDM feature maps on v7x's 64 MiB), or to get many pipeline steps.
# Costs one extra HBM read of x but each step is a small, deeply pipelined tile.
# ---------------------------------------------------------------------------
def _gn1_stats_kernel(x_ref, mean_ref, rstd_ref, s_ref, s2_ref, *, eps, inv_n):
    j = pl.program_id(1)

    @pl.when(j == 0)
    def _():
        s_ref[...] = jnp.zeros_like(s_ref)
        s2_ref[...] = jnp.zeros_like(s2_ref)

    x = x_ref[...].astype(jnp.float32)
    s_ref[...] += jnp.sum(x, keepdims=True)
    s2_ref[...] += jnp.sum(x * x, keepdims=True)

    @pl.when(j == pl.num_programs(1) - 1)
    def _():
        mean = s_ref[...] * inv_n
        var = s2_ref[...] * inv_n - mean * mean
        mean_ref[...] = mean
        rstd_ref[...] = lax.rsqrt(var + eps)


def _gn1_apply_kernel(x_ref, mean_ref, rstd_ref, w_ref, b_ref, o_ref):
    scale = rstd_ref[...] * w_ref[...]            # (C, 1)
    shift = b_ref[...] - mean_ref[...] * scale    # (C, 1)
    x = x_ref[...].astype(jnp.float32)
    o_ref[...] = (x * scale + shift).astype(o_ref.dtype)


def _pick_hw_chunk(hw, c, itemsize, max_bytes):
    """Largest multiple-of-128 divisor of hw whose per-step footprint fits."""
    if hw % 128 != 0:
        return hw                                  # equal-to-full-dim block is always legal
    cands = [k * 128 for k in range(1, hw // 128 + 1) if hw % (k * 128) == 0]

    def footprint(chunk):
        # double-buffered in + out tile (native dtype) + one f32 working copy
        return 4 * c * chunk * itemsize + 4 * c * chunk

    fitting = [ch for ch in cands if footprint(ch) <= max_bytes]
    return max(fitting) if fitting else min(cands)


def _pre_norm_chunked(x2, w2, b2, *, eps, max_bytes):
    b, c, hw = x2.shape
    itemsize = x2.dtype.itemsize
    inv_n = 1.0 / (c * hw)

    hw_chunk = _pick_hw_chunk(hw, c, itemsize, max_bytes)
    n_chunks = hw // hw_chunk

    stats_kernel = functools.partial(_gn1_stats_kernel, eps=eps, inv_n=inv_n)
    mean, rstd = pl.pallas_call(
        stats_kernel,
        out_shape=(jax.ShapeDtypeStruct((b, 1, 1), jnp.float32),
                   jax.ShapeDtypeStruct((b, 1, 1), jnp.float32)),
        grid=(b, n_chunks),
        in_specs=[pl.BlockSpec((pl.Squeezed(), c, hw_chunk), lambda i, j: (i, 0, j))],
        out_specs=[pl.BlockSpec((pl.Squeezed(), 1, 1), lambda i, j: (i, 0, 0)),
                   pl.BlockSpec((pl.Squeezed(), 1, 1), lambda i, j: (i, 0, 0))],
        scratch_shapes=[pltpu.VMEM((1, 1), jnp.float32),
                        pltpu.VMEM((1, 1), jnp.float32)],
        compiler_params=pltpu.CompilerParams(
            dimension_semantics=("parallel", "arbitrary"),
            vmem_limit_bytes=_VMEM_LIMIT_BYTES),
        cost_estimate=pl.CostEstimate(
            flops=3 * b * c * hw, transcendentals=b,
            bytes_accessed=b * c * hw * itemsize),
    )(x2)

    return pl.pallas_call(
        _gn1_apply_kernel,
        out_shape=jax.ShapeDtypeStruct((b, c, hw), x2.dtype),
        grid=(b, n_chunks),
        in_specs=[
            pl.BlockSpec((pl.Squeezed(), c, hw_chunk), lambda i, j: (i, 0, j)),
            pl.BlockSpec((pl.Squeezed(), 1, 1), lambda i, j: (i, 0, 0)),
            pl.BlockSpec((pl.Squeezed(), 1, 1), lambda i, j: (i, 0, 0)),
            pl.BlockSpec((c, 1), lambda i, j: (0, 0)),
            pl.BlockSpec((c, 1), lambda i, j: (0, 0)),
        ],
        out_specs=pl.BlockSpec((pl.Squeezed(), c, hw_chunk), lambda i, j: (i, 0, j)),
        compiler_params=pltpu.CompilerParams(
            dimension_semantics=("parallel", "parallel"),
            vmem_limit_bytes=_VMEM_LIMIT_BYTES),
        cost_estimate=pl.CostEstimate(
            flops=2 * b * c * hw, transcendentals=0,
            bytes_accessed=2 * b * c * hw * itemsize),
    )(x2, mean, rstd, w2, b2)


# ---------------------------------------------------------------------------
# Public wrapper: PreNorm(dim, fn)(x) for x of shape (B, C, H, W).
# ---------------------------------------------------------------------------
def pre_norm(x: jax.Array,
             weight: jax.Array,
             bias: jax.Array,
             fn=None,
             *,
             eps: float = 1e-5,
             max_fused_bytes: int = _FUSED_FOOTPRINT_BUDGET) -> jax.Array:
    b, c, h, w = x.shape
    hw = h * w

    x2 = x.reshape(b, c, hw)                       # native dtype, lane-dense last axis
    w2 = weight.astype(jnp.float32).reshape(c, 1)
    b2 = bias.astype(jnp.float32).reshape(c, 1)

    itemsize = x.dtype.itemsize
    # Double-buffered in + out tile (native dtype) + one f32 working copy.
    fused_footprint = 4 * c * hw * itemsize + 4 * c * hw

    if fused_footprint <= max_fused_bytes:
        y = _pre_norm_fused(x2, w2, b2, eps=eps)
    else:
        y = _pre_norm_chunked(x2, w2, b2, eps=eps, max_bytes=max_fused_bytes)

    y = y.reshape(b, c, h, w)

    # TODO(synk): `fn` in the PyTorch module is an arbitrary wrapped sub-module;
    # here it is an optional plain-JAX callable applied after the norm (identity
    # when None). Fusing the norm into fn's first matmul/conv would remove the
    # HBM round trip of y but needs that module's definition.
    return fn(y) if fn is not None else y


def _reference(x: jax.Array, weight: jax.Array, bias: jax.Array,
               eps: float = 1e-5) -> jax.Array:
    """Pure-JAX reference mirroring torch.nn.GroupNorm(1, dim)."""
    b = x.shape[0]
    xf = x.astype(jnp.float32).reshape(b, -1)
    mean = xf.mean(axis=1, keepdims=True)
    var = ((xf - mean) ** 2).mean(axis=1, keepdims=True)
    xn = ((xf - mean) / jnp.sqrt(var + eps)).reshape(x.shape)
    return xn * weight[None, :, None, None] + bias[None, :, None, None]


if __name__ == "__main__":
    key = jax.random.PRNGKey(0)
    k1, k2, k3 = jax.random.split(key, 3)

    batch, channels, spatial = 2, 4, 16
    x = jax.random.normal(k1, (batch, channels, spatial, spatial), jnp.float32)
    weight = 1.0 + 0.1 * jax.random.normal(k2, (channels,), jnp.float32)
    bias = 0.1 * jax.random.normal(k3, (channels,), jnp.float32)

    ref = _reference(x, weight, bias)

    # 1) fused whole-sample path (default when the slab fits VMEM)
    out = jax.block_until_ready(pre_norm(x, weight, bias))
    assert out.shape == x.shape and out.dtype == x.dtype
    assert jnp.allclose(out, ref, atol=2e-5, rtol=2e-5), "fused path mismatch"

    # 2) chunked two-pass path (what large samples on v7x would take)
    out_chunked = jax.block_until_ready(pre_norm(x, weight, bias, max_fused_bytes=0))
    assert jnp.allclose(out_chunked, ref, atol=2e-5, rtol=2e-5), "chunked path mismatch"

    # 3) bf16 I/O: dtype promotion now happens inside the kernel
    xb = x.astype(jnp.bfloat16)
    out_bf16 = jax.block_until_ready(pre_norm(xb, weight, bias))
    assert out_bf16.dtype == jnp.bfloat16
    assert jnp.allclose(out_bf16.astype(jnp.float32), ref, atol=5e-2, rtol=5e-2), \
        "bf16 path mismatch"

    print("KERNEL_OK")
</pallas_src>

<mosaic_0001>
module attributes {stable_mosaic.version = 11 : i64} {
  func.func @_groupnorm1_fused_kernel(%arg0: i32, %arg1: memref<1x4x256xf32, #tpu.memory_space<vmem>>, %arg2: memref<4x1xf32, #tpu.memory_space<vmem>>, %arg3: memref<4x1xf32, #tpu.memory_space<vmem>>, %arg4: memref<1x4x256xf32, #tpu.memory_space<vmem>>) attributes {dimension_semantics = [#tpu.dimension_semantics<parallel>], iteration_bounds = array<i64: 2>, scalar_prefetch = 0 : i64, scratch_operands = 0 : i64, tpu.core_type = #tpu.core_type<tc>, window_params = [{transform_indices = @transform_0, window_bounds = array<i64: 1, 4, 256>}, {pipeline_mode = #tpu.pipeline_mode<synchronous>, transform_indices = @transform_1, window_bounds = array<i64: 4, 1>}, {pipeline_mode = #tpu.pipeline_mode<synchronous>, transform_indices = @transform_2, window_bounds = array<i64: 4, 1>}, {transform_indices = @transform_3, window_bounds = array<i64: 1, 4, 256>}]} {
    %c0 = arith.constant 0 : index
    %c0_0 = arith.constant 0 : index
    %c0_1 = arith.constant 0 : index
    %0 = vector.load %arg1[%c0, %c0_0, %c0_1] : memref<1x4x256xf32, #tpu.memory_space<vmem>>, vector<1x4x256xf32>
    %1 = vector.shape_cast %0 : vector<1x4x256xf32> to vector<4x256xf32>
    %2 = vector.shape_cast %1 : vector<4x256xf32> to vector<1x4x256xf32>
    %cst = arith.constant dense<0.000000e+00> : vector<1xf32>
    %3 = vector.multi_reduction <add>, %2, %cst [1, 2] : vector<1x4x256xf32> to vector<1xf32>
    %4 = vector.shape_cast %3 : vector<1xf32> to vector<1x1x1xf32>
    %5 = vector.extract %4[0, 0, 0] : f32 from vector<1x1x1xf32>
    %6 = vector.broadcast %5 : f32 to vector<1x1xf32>
    %7 = arith.mulf %1, %1 : vector<4x256xf32>
    %8 = vector.shape_cast %7 : vector<4x256xf32> to vector<1x4x256xf32>
    %cst_2 = arith.constant dense<0.000000e+00> : vector<1xf32>
    %9 = vector.multi_reduction <add>, %8, %cst_2 [1, 2] : vector<1x4x256xf32> to vector<1xf32>
    %10 = vector.shape_cast %9 : vector<1xf32> to vector<1x1x1xf32>
    %11 = vector.extract %10[0, 0, 0] : f32 from vector<1x1x1xf32>
    %12 = vector.broadcast %11 : f32 to vector<1x1xf32>
    %cst_3 = arith.constant 9.765625E-4 : f32
    %13 = vector.broadcast %cst_3 : f32 to vector<1x1xf32>
    %14 = arith.mulf %6, %13 : vector<1x1xf32>
    %cst_4 = arith.constant 9.765625E-4 : f32
    %15 = vector.broadcast %cst_4 : f32 to vector<1x1xf32>
    %16 = arith.mulf %12, %15 : vector<1x1xf32>
    %17 = arith.mulf %14, %14 : vector<1x1xf32>
    %18 = arith.subf %16, %17 : vector<1x1xf32>
    %cst_5 = arith.constant 9.99999974E-6 : f32
    %19 = vector.broadcast %cst_5 : f32 to vector<1x1xf32>
    %20 = arith.addf %18, %19 : vector<1x1xf32>
    %21 = math.rsqrt %20 : vector<1x1xf32>
    %c0_6 = arith.constant 0 : index
    %c0_7 = arith.constant 0 : index
    %22 = vector.load %arg2[%c0_6, %c0_7] : memref<4x1xf32, #tpu.memory_space<vmem>>, vector<4x1xf32>
    %23 = vector.broadcast %21 : vector<1x1xf32> to vector<4x1xf32>
    %24 = arith.mulf %23, %22 : vector<4x1xf32>
    %c0_8 = arith.constant 0 : index
    %c0_9 = arith.constant 0 : index
    %25 = vector.load %arg3[%c0_8, %c0_9] : memref<4x1xf32, #tpu.memory_space<vmem>>, vector<4x1xf32>
    %26 = vector.broadcast %14 : vector<1x1xf32> to vector<4x1xf32>
    %27 = arith.mulf %26, %24 : vector<4x1xf32>
    %28 = arith.subf %25, %27 : vector<4x1xf32>
    %29 = vector.broadcast %24 : vector<4x1xf32> to vector<4x256xf32>
    %30 = arith.mulf %1, %29 : vector<4x256xf32>
    %31 = vector.broadcast %28 : vector<4x1xf32> to vector<4x256xf32>
    %32 = arith.addf %30, %31 : vector<4x256xf32>
    %c0_10 = arith.constant 0 : index
    %c0_11 = arith.constant 0 : index
    %c0_12 = arith.constant 0 : index
    %33 = vector.load %arg4[%c0_10, %c0_11, %c0_12] : memref<1x4x256xf32, #tpu.memory_space<vmem>>, vector<1x4x256xf32>
    %34 = vector.shape_cast %33 : vector<1x4x256xf32> to vector<4x256xf32>
    %35 = vector.shape_cast %32 : vector<4x256xf32> to vector<1x4x256xf32>
    tpu.vector_store %arg4[%c0_10, %c0_11, %c0_12], %35 {strides = array<i32>} : memref<1x4x256xf32, #tpu.memory_space<vmem>>, vector<1x4x256xf32>,
    return
  }
  func.func @transform_0(%arg0: i32) -> (i32, i32, i32) {
    %c0_i32 = arith.constant 0 : i32
    %c0_i32_0 = arith.constant 0 : i32
    %c0_i32_1 = arith.constant 0 : i32
    return %arg0, %c0_i32, %c0_i32_0 : i32, i32, i32
  }
  func.func @transform_1(%arg0: i32) -> (i32, i32) {
    %c0_i32 = arith.constant 0 : i32
    %c0_i32_0 = arith.constant 0 : i32
    %c0_i32_1 = arith.constant 0 : i32
    return %c0_i32, %c0_i32_0 : i32, i32
  }
  func.func @transform_2(%arg0: i32) -> (i32, i32) {
    %c0_i32 = arith.constant 0 : i32
    %c0_i32_0 = arith.constant 0 : i32
    %c0_i32_1 = arith.constant 0 : i32
    return %c0_i32, %c0_i32_0 : i32, i32
  }
  func.func @transform_3(%arg0: i32) -> (i32, i32, i32) {
    %c0_i32 = arith.constant 0 : i32
    %c0_i32_0 = arith.constant 0 : i32
    %c0_i32_1 = arith.constant 0 : i32
    return %arg0, %c0_i32, %c0_i32_0 : i32, i32, i32
  }
}

</mosaic_0001>

<bundles_post_ra>
// kernel: tpu_custom_call.1
= control target key start
LH: loop header
LB: loop body
LE: loop exit
PB: predicated region body
PF: predicated region fallthrough
CT: control target
= control target key end

     0   :  { %8 = vsyncpa [#allocation3], 0  ;;  %s900_s0 = inlined_call_operand.hbm [shape: f32[2,4,256], index: 0, kind: input, shape index: {}]   ;;  %s901_s1 = inlined_call_operand.hbm [shape: f32[4,1], index: 1, kind: input, shape index: {}]   ;;  %s902_s2 = inlined_call_operand.hbm [shape: f32[4,1], index: 2, kind: input, shape index: {}]   ;;  %s903_s3 = inlined_call_operand.hbm [shape: f32[2,4,256], index: 3, kind: output, shape index: {}]  }
   0x1   :  { %10 = vsyncpa [#allocation3 + $0x1], 0 }
   0x2   :  { %11 = vsyncpa [#allocation6], 0 }
   0x3   :  { %12 = vsyncpa [#allocation4], 0 }
   0x4   :  { %14 = vsyncpa [#allocation4 + $0x1], 0  ;;  %s671_s12 = smov 0   ;;  %s673_s13 = smov 0  }
   0x5   :  { %s675_s14 = smov 0   ;;  %s677_s15 = smov 0  }
   0x6 LB: > { %s692_s16 = sadd.s32 4294967295, %s643_s15   ;;  %s389_s17 = sadd.s32 4294967294, %s643_s15   ;;  %s643_s15 = sphi %s677_s15, %s923_s15   ;;  %s639_s14 = sphi %s675_s14, %s922_s14   ;;  %s635_s13 = sphi %s673_s13, %s921_s13   ;;  %s631_s12 = sphi %s671_s12, %s920_s12  }
   0x7   : > { %p40_p0 = scmp.ne.s32.totalorder %s635_s13, %s631_s12  ;;  %p904_p1 = scmp.eq.s32.totalorder %s692_s16, 0 }
   0x8   : > { %p112_p3 = scmp.eq.s32.totalorder %s389_s17, 1  ;;  %p390_p5 = scmp.ge.s32.totalorder %s643_s15, 1 }
   0x9   : > { %p701_p4 = por %p904_p1, %p40_p0  ;;  %p119_p7 = scmp.lt.s32.totalorder %s643_s15, 3 }
   0xa   : > { %p706_p6 = por %p112_p3, %p40_p0  ;;  %s645_s21 = smov [#allocation5]  }
   0xb   : > { %s907_s18 = scalar_select %p701_p4, 1, 0 }
   0xc   : > { %s908_s19 = scalar_select %p706_p6, 1, 0 }
   0xd   : > { %p711_p8 = pnand %p390_p5, %p119_p7  ;;  %s132_s22 = sshll.u32 %s645_s21, 4  ;;  %s133_s22 = int_to_ptr.vmem [resolvable:$true] %s132_s22 }
   0xe   : > { %s646_s23 = smov [#allocation7]   ;;  %s727_s26 = sadd.s32 1, %s643_s15  }
   0xf   : > { %s909_s20 = scalar_select %p711_p8, 1, 0 }
  0x10   : > { %p425_p10 = pneg %p711_p8  ;;  %s143_s24 = sshll.u32 %s646_s23, 4  ;;  %s724_s24 = int_to_ptr.vmem [resolvable:$true] %s143_s24 }
  0x11   : > { %s24_s27 = ssub.s32 %s643_s15, %s727_s26  ;;  %s487_s30 = scalar_lea.hbm %s901_s1, 64 }
  0x12   : > { %p720_p11 = pnand %p425_p10, %p904_p1  ;;  %p488_p12 = scmp.ne.s32.totalorder %s901_s1, %s487_s30 }
  0x13   : > { %p494_p5 = scmp.lt.u32.totalorder %s487_s30, %s901_s1 }
  0x14   : > { %p489_p13 = pneg %p720_p11 }
  0x16   : > { %p490_p0 = pnand %p489_p13, %p488_p12 }
  0x18   : > { %p491_p3 = pneg %p490_p0 }
  0x1a   : > { %p496_p7 = pnand %p494_p5, %p491_p3 }
  0x1c   : > { %499 = shalt.err (!%p496_p7)
}
  0x1d   : > { %s500_s8 = scalar_lea.vmem %s133_s22, 64  ;;  %p508_p2 = scmp.lt.s32.totalorder %s133_s22, %s133_s22 }
  0x1e   : > { %p501_p10 = scmp.ne.s32.totalorder %s133_s22, %s500_s8  ;;  %p509_p6 = scmp.lt.s32.totalorder %s500_s8, %s500_s8 }
  0x20   : > { %p503_p9 = pnand %p501_p10, %p489_p13  ;;  %p510_p4 = por %p509_p6, %p508_p2 }
  0x22   : > { %p504_p1 = pneg %p503_p9 }
  0x24   : > { %p511_p8 = pnand %p510_p4, %p504_p1 }
  0x26   : > { %514 = shalt.err (!%p511_p8)
}
  0x27   : > { %428 = dma.hbm_to_vmem [thread:$0]  (!%p720_p11), %s901_s1, 64, %s133_s22, [#allocation6]  }
  0x28   : > { %s515_s21 = scalar_lea.hbm %s902_s2, 64 }
  0x29   : > { %p516_p9 = scmp.ne.s32.totalorder %s902_s2, %s515_s21  ;;  %p522_p4 = scmp.lt.u32.totalorder %s515_s21, %s902_s2 }
  0x2b   : > { %p518_p2 = pnand %p516_p9, %p489_p13 }
  0x2d   : > { %p519_p1 = pneg %p518_p2 }
  0x2f   : > { %p524_p6 = pnand %p522_p4, %p519_p1 }
  0x31   : > { %527 = shalt.err (!%p524_p6)
}
  0x32   : > { %s528_s22 = scalar_lea.vmem %s724_s24, 64  ;;  %p536_p3 = scmp.lt.s32.totalorder %s724_s24, %s724_s24 }
  0x33   : > { %p529_p8 = scmp.ne.s32.totalorder %s724_s24, %s528_s22  ;;  %p537_p5 = scmp.lt.s32.totalorder %s528_s22, %s528_s22 }
  0x35   : > { %p531_p12 = pnand %p529_p8, %p489_p13  ;;  %p538_p7 = por %p537_p5, %p536_p3 }
  0x37   : > { %p532_p0 = pneg %p531_p12 }
  0x39   : > { %p539_p10 = pnand %p538_p7, %p532_p0 }
  0x3b   : > { %542 = shalt.err (!%p539_p10)
}
  0x3c   : > { %431 = dma.hbm_to_vmem [thread:$0]  (!%p720_p11), %s902_s2, 64, %s724_s24, [#allocation6]  }
  0x3d   : > { %p25_p13 = scmp.eq.s32.totalorder %s24_s27, 0  ;;  %s27_s6 = sadd.s32 1, %s639_s14 }
  0x3e   : > { %p34_p9 = scmp.ne.s32.totalorder %s639_s14, %s635_s13  ;;  %p35_p2 = scmp.eq.s32.totalorder %s643_s15, 0 }
  0x3f   : > { %s786_s25 = scalar_select %p25_p13, %s639_s14, %s27_s6  }
  0x40   : > { %p36_p1 = por %p35_p2, %p34_p9  ;;  %p911_p4 = scmp.eq.s32.totalorder %s692_s16, 1 }
  0x41   : > { %p442_p8 = scmp.lt.s32.totalorder %s643_s15, 2  ;;  %s154_s8 = sand.u32 1, %s639_s14  }
  0x42   : > { %p790_p6 = por %p911_p4, %p34_p9  ;;  %s394_s9 = sshll.u32 %s154_s8, 3 }
  0x43   : > { %s407_s10 = sshll.u32 %s643_s15, 7  ;;  %s158_s27 = scalar_lea.vmem [#allocation2], %s394_s9 }
  0x44   : > { %s800_s24 = scalar_lea.hbm %s900_s0, %s407_s10  ;;  %s166_s21 = sshll.u32 %s158_s27, 4  ;;  %s802_s21 = int_to_ptr.vmem [resolvable:$true] %s166_s21 }
  0x45   : > { %p804_p11 = pnand %p442_p8, %p36_p1  ;;  %s155_s28 = scalar_lea.sflag [#allocation3], %s154_s8 }
  0x46   : > { %s543_s29 = scalar_lea.hbm %s800_s24, 128  ;;  %s548_s4 = scalar_lea.hbm %s900_s0, 256 }
  0x47   : > { %p544_p12 = scmp.ne.s32.totalorder %s800_s24, %s543_s29  ;;  %p545_p0 = pneg %p804_p11 }
  0x48   : > { %p549_p7 = scmp.lt.u32.totalorder %s800_s24, %s900_s0  ;;  %p550_p10 = scmp.lt.u32.totalorder %s548_s4, %s543_s29 }
  0x49   : > { %p546_p3 = pnand %p545_p0, %p544_p12  ;;  %p552_p9 = scmp.lt.u32.totalorder %s543_s29, %s800_s24 }
  0x4a   : > { %p551_p13 = por %p550_p10, %p549_p7 }
  0x4b   : > { %p547_p5 = pneg %p546_p3 }
  0x4c   : > { %p553_p2 = por %p552_p9, %p551_p13 }
  0x4e   : > { %p554_p1 = pnand %p553_p2, %p547_p5 }
  0x50   : > { %557 = shalt.err (!%p554_p1)
}
  0x51   : > { %s558_s8 = scalar_lea.vmem %s802_s21, 128  ;;  %s647_s9 = smov [#allocation2]  }
  0x52   : > { %p559_p4 = scmp.ne.s32.totalorder %s802_s21, %s558_s8  ;;  %s563_s10 = sshll.u32 %s647_s9, 4  ;;  %s564_s10 = int_to_ptr.vmem [resolvable:$false] %s563_s10 }
  0x53   : > { %s565_s11 = scalar_lea.vmem %s564_s10, 256  ;;  %p566_p3 = scmp.lt.s32.totalorder %s802_s21, %s564_s10 }
  0x54   : > { %p561_p8 = pnand %p559_p4, %p545_p0  ;;  %p567_p7 = scmp.lt.s32.totalorder %s565_s11, %s558_s8 }
  0x56   : > { %p562_p12 = pneg %p561_p8  ;;  %p568_p10 = por %p567_p7, %p566_p3 }
  0x58   : > { %p569_p13 = pnand %p568_p10, %p562_p12 }
  0x5a   : > { %572 = shalt.err (!%p569_p13)
}
  0x5b   : > { %435 = dma.hbm_to_vmem [thread:$0]  (!%p804_p11), %s800_s24, 128, %s802_s21, %s155_s28  }
  0x5c   : > { %p914_p5 = scmp.ne.s32.totalorder %s909_s20, 0 }
  0x5d   : > { %s836_s17 = sand.u32 (!%p914_p5), 1, %s635_s13   ;;  %p915_p0 = scmp.ne.s32.totalorder (!%p914_p5), %s907_s18, 0 }
  0x5e   : > { %175 = sbr.rel (%p914_p5) target bundleno = 489 (0x1e9), region = 32  ;;  %s398_s27 = sshll.u32 (!%p914_p5), %s836_s17, 3 }
  0x5f   : > { %s178_s29 = scalar_lea.sflag (!%p914_p5), [#allocation3], %s836_s17  ;;  %s181_s30 = scalar_lea.vmem (!%p914_p5), [#allocation2], %s398_s27 }
  0x65   : > { %618 = dma.done.wait (%p915_p0), %s178_s29, 128  }
  0x66   : > { %620 = vsyncadd (%p915_p0), %s178_s29, 4294967168  ;;  %p916_p11 = scmp.eq.s32.totalorder %s692_s16, 0 }
  0x68   : > { %622 = dma.done.wait (%p916_p11), [#allocation6], 128   ;;  %p917_p9 = pmov %p916_p11 }
  0x69   : > { %vm216_vm0 = vcmask 1043456   ;;  %v212_v0 = vld [vmem:[%s181_s30] sm:$0xff]  ;;  %v648_v10 = vmov 0   ;;  %v253_v32 = vld [vmem:[#allocation5] sm:$0xf]  ;;  %v265_v40 = vlaneseq  ;;  %s408_s24 = sshll.u32 %s692_s16, 7 }
  0x6a   : > { %624 = vsyncadd (%p917_p9), [#allocation6], 4294967168  ;;  %v214_v1 = vcombine.high %v212_v0, %v212_v0  ;;  %v217_v2 = vsel %vm216_vm0, %v212_v0, 0.0  ;;  %v230_v3 = vmul.f32 %v212_v0, %v212_v0  ;;  %482 = vset.pattern.permute.xlu1 %v648_v10  ;;  %483 = vset.pattern.permute.xlu0 %v648_v10  ;;  %v255_v35 = vld [vmem:[#allocation7] sm:$0xf]  ;;  %s211_s21 = scalar_lea.vmem [#allocation8], %s398_s27  ;;  %s856_s4 = scalar_lea.hbm %s903_s3, %s408_s24 }
  0x6b   : > { %v649_v38 = vmov 839922192   ;;  %v266_v42 = vshrl.u32 %v265_v40, 7  ;;  %s300_s23 = sshll.u32 %s211_s21, 4  ;;  %s286_s5 = scalar_lea.sflag [#allocation4], %s836_s17  ;;  %s858_s23 = int_to_ptr.vmem [resolvable:$true] %s300_s23 }
  0x6c   : > { %v218_v4 = vsel %vm216_vm0, %v214_v1, 0.0  ;;  %v232_v5 = vcombine.high %v230_v3, %v230_v3  ;;  %v234_v6 = vsel %vm216_vm0, %v230_v3, 0.0  ;;  %v263_v39 = vunpack.c.l.s4 %v649_v38  ;;  %s573_s6 = scalar_lea.vmem %s858_s23, 128  ;;  %s650_s16 = smov [#allocation8]  }
  0x6d   : > { %v219_v7 = vadd.f32 %v218_v4, %v217_v2  ;;  %p574_p2 = scmp.ne.s32.totalorder %s858_s23, %s573_s6  ;;  %s577_s8 = sshll.u32 %s650_s16, 4  ;;  %s578_s8 = int_to_ptr.vmem [resolvable:$false] %s577_s8 }
  0x6e   : > { %v235_v8 = vsel %vm216_vm0, %v232_v5, 0.0  ;;  %v264_v41 = vunpack.c.0.s8 %v263_v39  ;;  %s579_s9 = scalar_lea.vmem %s578_s8, 256  ;;  %p580_p8 = scmp.lt.s32.totalorder %s858_s23, %s578_s8 }
  0x6f   : > { %220 = vadd.xlane.f32.xlu0 %v219_v7  ;;  %v236_v9 = vadd.f32 %v235_v8, %v234_v6  ;;  %p575_p1 = pnand %p574_p2, %p790_p6  ;;  %p581_p12 = scmp.lt.s32.totalorder %s579_s9, %s573_s6 }
  0x70   : > { %v267_v43 = vsub.s32 %v264_v41, %v266_v42 }
  0x71   : > { %p576_p4 = pneg %p575_p1  ;;  %p582_p3 = por %p581_p12, %p580_p8 }
  0x73   : > { %237 = vadd.xlane.f32.xlu0 %v236_v9  ;;  %p583_p7 = pnand %p582_p3, %p576_p4 }
  0xfc   : > { %v221_v11 = vpop.xlane.xlu0 %220 }
  0xfd   : > { %v222_v12 = vrot.slane %v221_v11, 4 }
  0xff   : > { %v223_v13 = vadd.f32 %v222_v12, %v221_v11 }
 0x100   : > { %v238_v14 = vpop.xlane.xlu0 %237 }
 0x101   : > { %v224_v15 = vrot.slane %v223_v13, 2  ;;  %v239_v16 = vrot.slane %v238_v14, 4 }
 0x103   : > { %v240_v17 = vadd.f32 %v239_v16, %v238_v14  ;;  %v225_v18 = vadd.f32 %v224_v15, %v223_v13 }
 0x105   : > { %v241_v19 = vrot.slane %v240_v17, 2  ;;  %v226_v20 = vrot.slane %v225_v18, 1 }
 0x107   : > { %v242_v21 = vadd.f32 %v241_v19, %v240_v17  ;;  %v227_v22 = vadd.f32 %v226_v20, %v225_v18 }
 0x109   : > { %409 = vpush %v227_v22  ;;  %v243_v23 = vrot.slane %v242_v21, 1 }
 0x10b   : > { %v244_v24 = vadd.f32 %v243_v23, %v242_v21 }
 0x10d   : > { %411 = vpush %v244_v24 }
 0x13a   : > { %s410_s18 = spop %409 }
 0x13b   : > { %v229_v25 = vstv %s410_s18 }
 0x13c   : > { %v247_v26 = vmul.f32 0.0009765625, %v229_v25 }
 0x13e   : > { %s412_s20 = spop %411  ;;  %v249_v28 = vmul.f32 %v247_v26, %v247_v26 }
 0x13f   : > { %v246_v27 = vstv %s412_s20 }
 0x140   : > { %v248_v29 = vmul.f32 0.0009765625, %v246_v27 }
 0x142   : > { %v250_v30 = vsub.f32 %v248_v29, %v249_v28 }
 0x144   : > { %v251_v31 = vadd.f32 1e-05, %v250_v30 }
 0x146   : > { %485 = vrsqrt.f32 %v251_v31 }
 0x150   : > { %v486_v33 = vpop.eup %485 }
 0x151   : > { %v254_v34 = vmul.f32 %v486_v33, %v253_v32 }
 0x153   : > { %260 = vperm.xlu1 %482, %v254_v34   ;;  %v256_v36 = vmul.f32 %v254_v34, %v247_v26 }
 0x155   : > { %v257_v37 = vsub.f32 %v255_v35, %v256_v36 }
 0x157   : > { %273 = vperm.xlu1 %482, %v257_v37  }
 0x1d2   : > { %v261_v44 = vpop.permute.xlu1 %260 }
 0x1d3   : > { %v268_v45 = vrot.slane %v261_v44, %v267_v43 }
 0x1d5   : > { %v270_v47 = vmul.f32 %v268_v45, %v212_v0 }
 0x1d6   : > { %v274_v46 = vpop.permute.xlu1 %273 }
 0x1d7   : > { %v281_v48 = vrot.slane %v274_v46, %v267_v43 }
 0x1d9   : > { %v283_v49 = vadd.f32 %v281_v48, %v270_v47 }
 0x1db   : > { %284 = vst [vmem:[%s211_s21] sm:$0xff] %v283_v49 }
 0x1dc   : > { %586 = shalt.err (!%p583_p7)
}
 0x1dd   : > { %s587_s10 = scalar_lea.hbm %s856_s4, 128  ;;  %s591_s27 = scalar_lea.hbm %s903_s3, 256 }
 0x1de   : > { %p588_p10 = scmp.ne.s32.totalorder %s856_s4, %s587_s10  ;;  %p592_p0 = scmp.lt.u32.totalorder %s856_s4, %s903_s3 }
 0x1df   : > { %p593_p11 = scmp.lt.u32.totalorder %s591_s27, %s587_s10  ;;  %p595_p2 = scmp.lt.u32.totalorder %s587_s10, %s856_s4 }
 0x1e0   : > { %p589_p13 = pnand %p588_p10, %p790_p6 }
 0x1e1   : > { %p594_p9 = por %p593_p11, %p592_p0 }
 0x1e2   : > { %p590_p5 = pneg %p589_p13 }
 0x1e3   : > { %p596_p1 = por %p595_p2, %p594_p9 }
 0x1e5   : > { %p597_p4 = pnand %p596_p1, %p590_p5 }
 0x1e7   : > { %600 = shalt.err (!%p597_p4)
}
 0x1e8   : > { %423 = dma.vmem_to_hbm [thread:$0]  (%p790_p6), %s858_s23, 128, %s856_s4, %s286_s5  }
 0x1e9 PF: > { %s312_s18 = sand.u32 1, %s631_s12   ;;  %p918_p8 = scmp.ne.s32.totalorder %s908_s19, 0 }
 0x1ea   : > { %p919_p12 = scmp.ge.s32.totalorder %s643_s15, 2  ;;  %s313_s20 = scalar_lea.sflag [#allocation4], %s312_s18 }
 0x1ec   : > { %p437_p3 = pnand %p919_p12, %p918_p8 }
 0x1ee   : > { %626 = dma.done.wait (!%p437_p3), %s313_s20, 128  }
 0x1ef   : > { %628 = vsyncadd (!%p437_p3), %s313_s20, 4294967168  ;;  %p17_p7 = scmp.ge.s32.totalorder %s727_s26, 4   ;;  %s920_s12 = smov %s635_s13 }
 0x1f0   : > { %s921_s13 = smov %s639_s14  ;;  %s922_s14 = smov %s786_s25 }
 0x1f1   : > { %s923_s15 = smov %s727_s26  ;;  %19 = sbr.rel (!%p17_p7) target bundleno = 6 (0x6), region = 85 }
 0x1f8   :  { %318 = vsyncpa [#allocation3], 1 }
 0x1f9   :  { %320 = vsyncpa [#allocation3 + $0x1], 1 }
 0x1fa   :  { %321 = vsyncpa [#allocation6], 1 }
 0x1fb   :  { %322 = vsyncpa [#allocation4], 1 }
 0x1fc   :  { %324 = vsyncpa [#allocation4 + $0x1], 1 }

</bundles_post_ra>
